<compile_context>
chip_gen: v5e
topology: v5e:2x2
jax: 0.10.0
libtpu: 0.0.40
codegen_flags: <defaults>
</compile_context>

<pallas_src>
import functools

import jax
import jax.numpy as jnp
from jax import lax
from jax.experimental import pallas as pl
from jax.experimental.pallas import tpu as pltpu


def _round_up(x, m):
    return (x + m - 1) // m * m


def _attention_kernel(xq_ref, xkv_ref, wq_ref, wkv_ref, o_ref, *, scale, kp):
    # Blocks (batch dim squeezed): xq_ref (Tq, E), xkv_ref (Tk, E),
    # wq_ref (E, Kp), wkv_ref (E, Kp+Vp), o_ref (Tq, Vp).
    xq = xq_ref[...]
    xkv = xkv_ref[...]

    # Q projection; fold softmax scale into q (cheaper than scaling (Tq,Tk)).
    q = jnp.dot(xq, wq_ref[...], preferred_element_type=jnp.float32) * scale  # (Tq, Kp)

    # Fused K|V projection: one MXU matmul, x_kv read once.
    kv = jnp.dot(xkv, wkv_ref[...], preferred_element_type=jnp.float32)       # (Tk, Kp+Vp)
    k = kv[:, :kp]          # (Tk, Kp)  -- slice at lane boundary (Kp % 128 == 0)
    v = kv[:, kp:]          # (Tk, Vp)

    # Scores: contract last dims directly, no transpose of k materialized.
    s = lax.dot_general(q, k, dimension_numbers=(((1,), (1,)), ((), ())),
                        preferred_element_type=jnp.float32)                   # (Tq, Tk)

    # Numerically-stable softmax over keys; reciprocal on the EUP.
    s = s - jnp.max(s, axis=-1, keepdims=True)
    p = jnp.exp(s)
    p = p * pl.reciprocal(jnp.sum(p, axis=-1, keepdims=True), approx=True)

    # Dropout: identity (eval mode).  Causal mask: intentional no-op, matching
    # the original module's non-in-place masked_fill.

    o_ref[...] = jnp.dot(p, v, preferred_element_type=jnp.float32).astype(o_ref.dtype)


def transformer_attention(x_q, x_kv, wq, wk, wv):
    """x_q: (B, Tq, E), x_kv: (B, Tk, E).
    wq/wk: (kdim, E), wv: (vdim, E) -- PyTorch nn.Linear weight layout.
    Returns (B, Tq, vdim) float32."""
    B, Tq, E = x_q.shape
    _, Tk, _ = x_kv.shape
    kdim = wq.shape[0]
    vdim = wv.shape[0]
    scale = float(kdim) ** (-0.5)

    # Pad projection output dims to 128 lanes (lane-dense stores, filled MXU).
    kp = _round_up(kdim, 128)
    vp = _round_up(vdim, 128)

    wq_t = jnp.zeros((E, kp), jnp.float32).at[:, :kdim].set(wq.T.astype(jnp.float32))
    wk_t = jnp.zeros((E, kp), jnp.float32).at[:, :kdim].set(wk.T.astype(jnp.float32))
    wv_t = jnp.zeros((E, vp), jnp.float32).at[:, :vdim].set(wv.T.astype(jnp.float32))
    wkv_t = jnp.concatenate([wk_t, wv_t], axis=1)                 # (E, Kp+Vp)

    kernel = functools.partial(_attention_kernel, scale=scale, kp=kp)

    flops = 2 * B * (Tq * E * kp + Tk * E * (kp + vp) + Tq * Tk * kp + Tq * Tk * vp)
    bytes_accessed = 4 * (x_q.size + x_kv.size + wq_t.size + wkv_t.size + B * Tq * vp)
    cost = pl.CostEstimate(flops=flops,
                           transcendentals=B * Tq * Tk,
                           bytes_accessed=bytes_accessed)

    grid_spec = pltpu.PrefetchScalarGridSpec(
        num_scalar_prefetch=0,
        grid=(B,),
        in_specs=[
            pl.BlockSpec((pl.Squeezed(), Tq, E), lambda b: (b, 0, 0)),  # x_q
            pl.BlockSpec((pl.Squeezed(), Tk, E), lambda b: (b, 0, 0)),  # x_kv
            pl.BlockSpec((E, kp), lambda b: (0, 0)),                    # WQ^T (padded)
            pl.BlockSpec((E, kp + vp), lambda b: (0, 0)),               # [WK^T | WV^T] (padded)
        ],
        out_specs=pl.BlockSpec((pl.Squeezed(), Tq, vp), lambda b: (b, 0, 0)),
    )

    out_padded = pl.pallas_call(
        kernel,
        out_shape=jax.ShapeDtypeStruct((B, Tq, vp), jnp.float32),
        grid_spec=grid_spec,
        compiler_params=pltpu.CompilerParams(
            dimension_semantics=("parallel",)),
        cost_estimate=cost,
    )(x_q, x_kv, wq_t, wkv_t)

    return out_padded[..., :vdim]


def reference_attention(x_q, x_kv, wq, wk, wv):
    """Pure-JAX reference mirroring the PyTorch forward (eval mode)."""
    q = x_q @ wq.T
    k = x_kv @ wk.T
    v = x_kv @ wv.T
    kdim = k.shape[-1]
    s = jnp.einsum("bqd,bkd->bqk", q, k) * kdim ** (-0.5)
    p = jax.nn.softmax(s, axis=-1)
    return jnp.einsum("bqk,bkd->bqd", p, v)


if __name__ == "__main__":
    # Module config (synthetic, deterministic init)
    embed_dim, kdim, vdim = 32, 16, 16
    B, T = 2, 8

    key = jax.random.PRNGKey(0)
    k1, k2, k3, k4 = jax.random.split(key, 4)

    # nn.Linear(embed_dim, out).weight has shape (out, embed_dim).
    wq = jax.random.normal(k1, (kdim, embed_dim), jnp.float32) * 0.1
    wk = jax.random.normal(k2, (kdim, embed_dim), jnp.float32) * 0.1
    wv = jax.random.normal(k3, (vdim, embed_dim), jnp.float32) * 0.1

    # Self-attention: x[0] == x[-1]
    x = jax.random.normal(k4, (B, T, embed_dim), jnp.float32)

    out = transformer_attention(x, x, wq, wk, wv)
    out = jax.block_until_ready(out)

    ref = reference_attention(x, x, wq, wk, wv)
    assert out.shape == (B, T, vdim)
    # approx=True reciprocal (EUP vrcp) => slightly relaxed tolerance vs exact f32 ref.
    assert jnp.allclose(out, ref, atol=2e-3, rtol=2e-3), "mismatch vs reference"

    print("KERNEL_OK")
</pallas_src>

<mosaic_0001>
module attributes {stable_mosaic.version = 11 : i64} {
  func.func @_attention_kernel(%arg0: i32, %arg1: memref<1x8x32xf32, #tpu.memory_space<vmem>>, %arg2: memref<1x8x32xf32, #tpu.memory_space<vmem>>, %arg3: memref<32x128xf32, #tpu.memory_space<vmem>>, %arg4: memref<32x256xf32, #tpu.memory_space<vmem>>, %arg5: memref<1x8x128xf32, #tpu.memory_space<vmem>>) attributes {dimension_semantics = [#tpu.dimension_semantics<parallel>], iteration_bounds = array<i64: 2>, scalar_prefetch = 0 : i64, scratch_operands = 0 : i64, tpu.core_type = #tpu.core_type<tc>, window_params = [{transform_indices = @transform_0, window_bounds = array<i64: 1, 8, 32>}, {transform_indices = @transform_1, window_bounds = array<i64: 1, 8, 32>}, {pipeline_mode = #tpu.pipeline_mode<synchronous>, transform_indices = @transform_2, window_bounds = array<i64: 32, 128>}, {pipeline_mode = #tpu.pipeline_mode<synchronous>, transform_indices = @transform_3, window_bounds = array<i64: 32, 256>}, {transform_indices = @transform_4, window_bounds = array<i64: 1, 8, 128>}]} {
    %c0 = arith.constant 0 : index
    %c0_0 = arith.constant 0 : index
    %c0_1 = arith.constant 0 : index
    %0 = vector.load %arg1[%c0, %c0_0, %c0_1] : memref<1x8x32xf32, #tpu.memory_space<vmem>>, vector<1x8x32xf32>
    %1 = vector.shape_cast %0 : vector<1x8x32xf32> to vector<8x32xf32>
    %c0_2 = arith.constant 0 : index
    %c0_3 = arith.constant 0 : index
    %c0_4 = arith.constant 0 : index
    %2 = vector.load %arg2[%c0_2, %c0_3, %c0_4] : memref<1x8x32xf32, #tpu.memory_space<vmem>>, vector<1x8x32xf32>
    %3 = vector.shape_cast %2 : vector<1x8x32xf32> to vector<8x32xf32>
    %c0_5 = arith.constant 0 : index
    %c0_6 = arith.constant 0 : index
    %4 = vector.load %arg3[%c0_5, %c0_6] : memref<32x128xf32, #tpu.memory_space<vmem>>, vector<32x128xf32>
    %cst = arith.constant dense<0.000000e+00> : vector<8x128xf32>
    %5 = tpu.matmul %1, %4, %cst {dimension_numbers = #tpu.dot_dimension_numbers<[1], [0], [0], [1], [0, 0, 1, 1], [], []>} : vector<8x32xf32>, vector<32x128xf32>, vector<8x128xf32> -> vector<8x128xf32>
    %cst_7 = arith.constant 2.500000e-01 : f32
    %6 = vector.broadcast %cst_7 : f32 to vector<8x128xf32>
    %7 = arith.mulf %5, %6 : vector<8x128xf32>
    %c0_8 = arith.constant 0 : index
    %c0_9 = arith.constant 0 : index
    %8 = vector.load %arg4[%c0_8, %c0_9] : memref<32x256xf32, #tpu.memory_space<vmem>>, vector<32x256xf32>
    %cst_10 = arith.constant dense<0.000000e+00> : vector<8x256xf32>
    %9 = tpu.matmul %3, %8, %cst_10 {dimension_numbers = #tpu.dot_dimension_numbers<[1], [0], [0], [1], [0, 0, 1, 1], [], []>} : vector<8x32xf32>, vector<32x256xf32>, vector<8x256xf32> -> vector<8x256xf32>
    %10 = vector.extract_strided_slice %9 {offsets = [0, 0], sizes = [8, 128], strides = [1, 1]} : vector<8x256xf32> to vector<8x128xf32>
    %11 = vector.extract_strided_slice %9 {offsets = [0, 128], sizes = [8, 128], strides = [1, 1]} : vector<8x256xf32> to vector<8x128xf32>
    %cst_11 = arith.constant dense<0.000000e+00> : vector<8x8xf32>
    %12 = tpu.matmul %7, %10, %cst_11 {dimension_numbers = #tpu.dot_dimension_numbers<[1], [1], [0], [0], [0, 0, 1, 0], [], []>} : vector<8x128xf32>, vector<8x128xf32>, vector<8x8xf32> -> vector<8x8xf32>
    %cst_12 = arith.constant dense<0xFF800000> : vector<8xf32>
    %13 = vector.multi_reduction <maximumf>, %12, %cst_12 [1] : vector<8x8xf32> to vector<8xf32>
    %14 = vector.shape_cast %13 : vector<8xf32> to vector<8x1xf32>
    %15 = vector.broadcast %14 : vector<8x1xf32> to vector<8x8xf32>
    %16 = arith.subf %12, %15 : vector<8x8xf32>
    %17 = math.exp %16 : vector<8x8xf32>
    %cst_13 = arith.constant dense<0.000000e+00> : vector<8xf32>
    %18 = vector.multi_reduction <add>, %17, %cst_13 [1] : vector<8x8xf32> to vector<8xf32>
    %19 = vector.shape_cast %18 : vector<8xf32> to vector<8x1xf32>
    %20 = tpu.reciprocal %19 {approx = true} : vector<8x1xf32> -> vector<8x1xf32>
    %21 = vector.broadcast %20 : vector<8x1xf32> to vector<8x8xf32>
    %22 = arith.mulf %17, %21 : vector<8x8xf32>
    %cst_14 = arith.constant dense<0.000000e+00> : vector<8x128xf32>
    %23 = tpu.matmul %22, %11, %cst_14 {dimension_numbers = #tpu.dot_dimension_numbers<[1], [0], [0], [1], [0, 0, 1, 1], [], []>} : vector<8x8xf32>, vector<8x128xf32>, vector<8x128xf32> -> vector<8x128xf32>
    %c0_15 = arith.constant 0 : index
    %c0_16 = arith.constant 0 : index
    %c0_17 = arith.constant 0 : index
    %24 = vector.load %arg5[%c0_15, %c0_16, %c0_17] : memref<1x8x128xf32, #tpu.memory_space<vmem>>, vector<1x8x128xf32>
    %25 = vector.shape_cast %24 : vector<1x8x128xf32> to vector<8x128xf32>
    %26 = vector.shape_cast %23 : vector<8x128xf32> to vector<1x8x128xf32>
    tpu.vector_store %arg5[%c0_15, %c0_16, %c0_17], %26 {strides = array<i32>} : memref<1x8x128xf32, #tpu.memory_space<vmem>>, vector<1x8x128xf32>,
    return
  }
  func.func @transform_0(%arg0: i32) -> (i32, i32, i32) {
    %c0_i32 = arith.constant 0 : i32
    %c0_i32_0 = arith.constant 0 : i32
    %c0_i32_1 = arith.constant 0 : i32
    return %arg0, %c0_i32, %c0_i32_0 : i32, i32, i32
  }
  func.func @transform_1(%arg0: i32) -> (i32, i32, i32) {
    %c0_i32 = arith.constant 0 : i32
    %c0_i32_0 = arith.constant 0 : i32
    %c0_i32_1 = arith.constant 0 : i32
    return %arg0, %c0_i32, %c0_i32_0 : i32, i32, i32
  }
  func.func @transform_2(%arg0: i32) -> (i32, i32) {
    %c0_i32 = arith.constant 0 : i32
    %c0_i32_0 = arith.constant 0 : i32
    %c0_i32_1 = arith.constant 0 : i32
    return %c0_i32, %c0_i32_0 : i32, i32
  }
  func.func @transform_3(%arg0: i32) -> (i32, i32) {
    %c0_i32 = arith.constant 0 : i32
    %c0_i32_0 = arith.constant 0 : i32
    %c0_i32_1 = arith.constant 0 : i32
    return %c0_i32, %c0_i32_0 : i32, i32
  }
  func.func @transform_4(%arg0: i32) -> (i32, i32, i32) {
    %c0_i32 = arith.constant 0 : i32
    %c0_i32_0 = arith.constant 0 : i32
    %c0_i32_1 = arith.constant 0 : i32
    return %arg0, %c0_i32, %c0_i32_0 : i32, i32, i32
  }
}

</mosaic_0001>

<bundles_post_ra>
// kernel: tpu_custom_call.1
= control target key start
LH: loop header
LB: loop body
LE: loop exit
PB: predicated region body
PF: predicated region fallthrough
CT: control target
= control target key end

     0   :  { %s1074_s0 = inlined_call_operand.hbm [shape: f32[2,8,32], index: 0, kind: input, shape index: {}]   ;;  %s1075_s1 = inlined_call_operand.hbm [shape: f32[2,8,32], index: 1, kind: input, shape index: {}]   ;;  %s1076_s2 = inlined_call_operand.hbm [shape: f32[32,128], index: 2, kind: input, shape index: {}]   ;;  %s1077_s3 = inlined_call_operand.hbm [shape: f32[32,256], index: 3, kind: input, shape index: {}]   ;;  %s1078_s4 = inlined_call_operand.hbm [shape: f32[2,8,128], index: 4, kind: output, shape index: {}]  }
   0x1   :  { %1079 = sst [smem:[#allocation17_spill]] %s1076_s2 }
   0x2   :  { %1080 = sst [smem:[#allocation18_spill]] %s1077_s3 }
   0x3   :  { %9 = vsyncpa [#allocation3], 0 }
   0x4   :  { %11 = vsyncpa [#allocation3 + $0x1], 0 }
   0x5   :  { %12 = vsyncpa [#allocation6], 0 }
   0x6   :  { %14 = vsyncpa [#allocation6 + $0x1], 0 }
   0x7   :  { %15 = vsyncpa [#allocation9], 0 }
   0x8   :  { %16 = vsyncpa [#allocation4], 0 }
   0x9   :  { %18 = vsyncpa [#allocation4 + $0x1], 0  ;;  %s887_s15 = smov 0   ;;  %s889_s16 = smov 0  }
   0xa   :  { %s891_s17 = smov 0   ;;  %s893_s18 = smov 0  }
   0xb LB: > { %s1081_s2 = sld [smem:[#allocation17_spill]]  ;;  %s911_s22 = sadd.s32 4294967295, %s854_s18   ;;  %s854_s18 = sphi %s893_s18, %s1095_s18   ;;  %s850_s17 = sphi %s891_s17, %s1094_s17   ;;  %s846_s16 = sphi %s889_s16, %s1093_s16   ;;  %s842_s15 = sphi %s887_s15, %s1092_s15  }
   0xc   : > { %p554_p0 = scmp.ge.s32.totalorder %s854_s18, 1  ;;  %p45_p1 = scmp.eq.s32.totalorder %s911_s22, 0 }
   0xd   : > { %p149_p2 = scmp.lt.s32.totalorder %s854_s18, 3  ;;  %s856_s24 = smov [#allocation7]  }
   0xe   : > { %s162_s25 = sshll.u32 %s856_s24, 4  ;;  %s1083_s3 = sld [smem:[#allocation18_spill]]  ;;  %s163_s25 = int_to_ptr.vmem [resolvable:$true] %s162_s25 }
   0xf   : > { %p916_p3 = pnand %p554_p0, %p149_p2  ;;  %s857_s29 = smov [#allocation8]  }
  0x10   : > { %s176_s30 = sshll.u32 %s857_s29, 4  ;;  %s858_s5 = smov 128   ;;  %s177_s30 = int_to_ptr.vmem [resolvable:$true] %s176_s30 }
  0x11   : > { %s160_s21 = sshll.u32 %s1081_s2, 4  ;;  %p590_p4 = pneg %p916_p3  ;;  %s161_s21 = int_to_ptr.hbm [resolvable:$true] %s160_s21 }
  0x12   : > { %s859_s6 = smov 8   ;;  %s860_s7 = smov 256  }
  0x13   : > { %p591_p6 = pnand %p590_p4, %p45_p1  ;;  %s861_s8 = smov 16  }
  0x14   : > { %s174_s28 = sshll.u32 %s1083_s3, 4  ;;  %s553_s9 = sadd.s32 4294967294, %s854_s18   ;;  %s175_s28 = int_to_ptr.hbm [resolvable:$true] %s174_s28 }
  0x15   : > { %593 = dma.hbm_to_vmem [thread:$0]  (!%p591_p6), %s161_s21, 512, %s163_s25, [#allocation6], %s858_s5, %s858_s5, %s859_s6  }
  0x16   : > { %596 = dma.hbm_to_vmem [thread:$0]  (!%p591_p6), %s175_s28, 1024, %s177_s30, [#allocation9], %s860_s7, %s860_s7, %s861_s8  }
  0x17   : > { %s930_s10 = sadd.s32 1, %s854_s18   ;;  %s31_s12 = sadd.s32 1, %s850_s17 }
  0x18   : > { %s28_s11 = ssub.s32 %s854_s18, %s930_s10  ;;  %p38_p8 = scmp.ne.s32.totalorder %s850_s17, %s846_s16 }
  0x19   : > { %p29_p7 = scmp.eq.s32.totalorder %s28_s11, 0  ;;  %p39_p9 = scmp.eq.s32.totalorder %s854_s18, 0 }
  0x1a   : > { %p44_p10 = scmp.ne.s32.totalorder %s846_s16, %s842_s15  ;;  %p136_p13 = scmp.eq.s32.totalorder %s911_s22, 1 }
  0x1b   : > { %s941_s13 = scalar_select %p29_p7, %s850_s17, %s31_s12  }
  0x1c   : > { %p943_p11 = por %p39_p9, %p38_p8  ;;  %p949_p12 = por %p45_p1, %p44_p10 }
  0x1d   : > { %1084 = sst [smem:[#allocation16_spill]] %s941_s13  ;;  %p142_p0 = scmp.eq.s32.totalorder %s553_s9, 1 }
  0x1e   : > { %p610_p2 = scmp.lt.s32.totalorder %s854_s18, 2  ;;  %s190_s20 = sand.u32 1, %s850_s17  }
  0x1f   : > { %p956_p4 = por %p136_p13, %p38_p8  ;;  %p960_p6 = por %p142_p0, %p44_p10 }
  0x20   : > { %s964_s25 = sshll.u32 %s190_s20, 3  ;;  %s559_s26 = sshll.u32 %s854_s18, 3 }
  0x21   : > { %s198_s29 = scalar_lea.hbm %s1074_s0, %s559_s26  ;;  %s194_s30 = scalar_lea.vmem [#allocation2], %s964_s25 }
  0x22   : > { %s202_s5 = sshll.u32 %s194_s30, 4  ;;  %s200_s6 = sshll.u32 %s198_s29, 4  ;;  %s203_s5 = int_to_ptr.vmem [resolvable:$true] %s202_s5  ;;  %s201_s6 = int_to_ptr.hbm [resolvable:$true] %s200_s6 }
  0x23   : > { %p973_p7 = pnand %p610_p2, %p943_p11  ;;  %s217_s11 = scalar_lea.hbm %s1075_s1, %s559_s26 }
  0x24   : > { %s209_s12 = sand.u32 1, %s854_s18   ;;  %s191_s2 = scalar_lea.sflag [#allocation3], %s190_s20 }
  0x25   : > { %s716_s27 = sshra.s32 %s201_s6, 4  ;;  %p720_p9 = pneg %p973_p7  ;;  %s717_s27 = int_to_ptr.hbm [resolvable:$true] %s716_s27 }
  0x26   : > { %s718_s28 = scalar_lea.hbm %s717_s27, 8  ;;  %s723_s30 = scalar_lea.hbm %s1074_s0, 16 }
  0x27   : > { %p719_p8 = scmp.ne.s32.totalorder %s717_s27, %s718_s28  ;;  %p724_p13 = scmp.lt.s32.totalorder %s717_s27, %s1074_s0 }
  0x28   : > { %p725_p0 = scmp.lt.s32.totalorder %s723_s30, %s718_s28 }
  0x29   : > { %p721_p10 = pnand %p720_p9, %p719_p8 }
  0x2a   : > { %p726_p2 = por %p725_p0, %p724_p13 }
  0x2b   : > { %p722_p11 = pneg %p721_p10 }
  0x2d   : > { %p727_p5 = pnand %p726_p2, %p722_p11 }
  0x2f   : > { %730 = shalt.err (!%p727_p5)
}
  0x30   : > { %600 = dma.hbm_to_vmem [thread:$0]  (!%p973_p7), %s201_s6, 128, %s203_s5, %s191_s2  }
  0x31   : > { %s219_s20 = sshll.u32 %s217_s11, 4  ;;  %s213_s26 = scalar_lea.vmem [#allocation5], %s964_s25  ;;  %s220_s20 = int_to_ptr.hbm [resolvable:$true] %s219_s20 }
  0x32   : > { %s221_s3 = sshll.u32 %s213_s26, 4  ;;  %s210_s14 = scalar_lea.sflag [#allocation6], %s209_s12  ;;  %s222_s3 = int_to_ptr.vmem [resolvable:$true] %s221_s3 }
  0x33   : > { %s746_s29 = sshra.s32 %s220_s20, 4  ;;  %s753_s30 = scalar_lea.hbm %s1075_s1, 16  ;;  %s747_s29 = int_to_ptr.hbm [resolvable:$true] %s746_s29 }
  0x34   : > { %s748_s13 = scalar_lea.hbm %s747_s29, 8  ;;  %p754_p5 = scmp.lt.s32.totalorder %s747_s29, %s1075_s1 }
  0x35   : > { %p749_p8 = scmp.ne.s32.totalorder %s747_s29, %s748_s13  ;;  %p755_p13 = scmp.lt.s32.totalorder %s753_s30, %s748_s13 }
  0x37   : > { %p751_p10 = pnand %p749_p8, %p720_p9  ;;  %p756_p0 = por %p755_p13, %p754_p5 }
  0x39   : > { %p752_p11 = pneg %p751_p10 }
  0x3b   : > { %p757_p2 = pnand %p756_p0, %p752_p11 }
  0x3d   : > { %760 = shalt.err (!%p757_p2)
}
  0x3e   : > { %603 = dma.hbm_to_vmem [thread:$0]  (!%p973_p7), %s220_s20, 128, %s222_s3, %s210_s14  }
  0x3f   : > { %230 = sbr.rel (%p916_p3) target bundleno = 734 (0x2de), region = 36  ;;  %s1009_s25 = sand.u32 (!%p916_p3), 1, %s846_s16  }
  0x40   : > { %s1012_s5 = sshll.u32 (!%p916_p3), %s1009_s25, 3  ;;  %s233_s6 = scalar_lea.sflag (!%p916_p3), [#allocation3], %s1009_s25 }
  0x41   : > { %s236_s13 = scalar_lea.vmem (!%p916_p3), [#allocation2], %s1012_s5 }
  0x44   : > { %821 = dma.done.wait (%p949_p12), %s233_s6, 128  }
  0x45   : > { %823 = vsyncadd (%p949_p12), %s233_s6, 4294967168  ;;  %s242_s3 = sand.u32 1, %s911_s22   ;;  %s246_s7 = scalar_lea.vmem [#allocation5], %s1012_s5 }
  0x46   : > { %s243_s23 = scalar_lea.sflag [#allocation6], %s242_s3 }
  0x47   : > { %825 = dma.done.wait (%p949_p12), %s243_s23, 128  }
  0x48   : > { %827 = vsyncadd (%p949_p12), %s243_s23, 4294967168 }
  0x49   : > { %829 = dma.done.wait (%p45_p1), [#allocation6], 512  }
  0x4a   : > { %831 = vsyncadd (%p45_p1), [#allocation6], 4294966784 }
  0x4b   : > { %833 = dma.done.wait (%p45_p1), [#allocation9], 1024  }
  0x4c   : > { %835 = vsyncadd (%p45_p1), [#allocation9], 4294966272  ;;  %v324_v0 = vld [vmem:[#allocation8 + $0x30] sm:$0xff]  ;;  %v292_v1 = vld [vmem:[#allocation7 + $0x18] sm:$0xff]  ;;  %vm293_vm0 = vcmask 261120   ;;  %vm389_vm1 = vcmask 64512  }
  0x4d   : > { %v322_v2 = vld [vmem:[#allocation8 + $0x20] sm:$0xff]  ;;  %341 = vmatpush.msra.mxu1 %v324_v0  ;;  %309 = vmatpush.msra.mxu0 %v292_v1  ;;  %v291_v3 = vld [vmem:[#allocation7 + $0x10] sm:$0xff]  ;;  %v290_v5 = vld [vmem:[#allocation7 + $0x8] sm:$0xff]  ;;  %s573_s19 = sshll.u32 %s911_s22, 3  ;;  %s286_s20 = scalar_lea.vmem [#allocation10], %s1012_s5 }
  0x4e   : > { %v320_v4 = vld [vmem:[#allocation8 + $0x10] sm:$0xff]  ;;  %v318_v6 = vld [vmem:[#allocation8] sm:$0xff]  ;;  %v325_v13 = vld [vmem:[#allocation8 + $0x38] sm:$0xff]  ;;  %s436_s9 = scalar_lea.hbm %s1078_s4, %s573_s19  ;;  %s438_s26 = sshll.u32 %s286_s20, 4  ;;  %s439_s26 = int_to_ptr.vmem [resolvable:$true] %s438_s26 }
  0x4f   : > { %342 = vmatpush.msra.mxu1 %v322_v2  ;;  %310 = vmatpush.msra.mxu0 %v291_v3  ;;  %v289_v7 = vld [vmem:[#allocation7] sm:$0xff]  ;;  %v288_v8 = vld [vmem:[%s246_s7] sm:$0xff]  ;;  %v323_v14 = vld [vmem:[#allocation8 + $0x28] sm:$0xff]  ;;  %s440_s14 = sshll.u32 %s436_s9, 4  ;;  %s426_s29 = scalar_lea.sflag [#allocation4], %s1009_s25  ;;  %s441_s14 = int_to_ptr.hbm [resolvable:$true] %s440_s14 }
  0x50   : > { %v287_v9 = vld [vmem:[%s236_s13] sm:$0xff]  ;;  %361 = vmatpush.msra.mxu2 %v325_v13  ;;  %v321_v15 = vld [vmem:[#allocation8 + $0x18] sm:$0xff]  ;;  %s790_s27 = sshra.s32 %s441_s14, 4  ;;  %s796_s8 = scalar_lea.hbm %s1078_s4, 16  ;;  %s791_s27 = int_to_ptr.hbm [resolvable:$true] %s790_s27 }
  0x51   : > { %343 = vmatpush.msra.mxu1 %v320_v4  ;;  %311 = vmatpush.msra.mxu0 %v290_v5  ;;  %v319_v16 = vld [vmem:[#allocation8 + $0x8] sm:$0xff]  ;;  %s792_s28 = scalar_lea.hbm %s791_s27, 8  ;;  %p797_p7 = scmp.lt.s32.totalorder %s791_s27, %s1078_s4 }
  0x52   : > { %362 = vmatpush.msra.mxu2 %v323_v14  ;;  %p793_p1 = scmp.ne.s32.totalorder %s791_s27, %s792_s28  ;;  %p798_p9 = scmp.lt.s32.totalorder %s796_s8, %s792_s28 }
  0x53   : > { %344 = vmatpush.msra.mxu1 %v318_v6  ;;  %312 = vmatpush.msra.mxu0 %v289_v7 }
  0x54   : > { %569 = vmatmul.msk.f32.vlgmr.msra.gmra.mxu1 %vm293_vm0, %v288_v8  ;;  %568 = vmatmul.msk.f32.vlgmr.msra.gmra.mxu0 %vm293_vm0, %v287_v9  ;;  %p794_p3 = pnand %p793_p1, %p956_p4  ;;  %p799_p8 = por %p798_p9, %p797_p7 }
  0x55   : > { %363 = vmatpush.msra.mxu2 %v321_v15 }
  0x56   : > { %p795_p12 = pneg %p794_p3 }
  0x57   : > { %364 = vmatpush.msra.mxu2 %v319_v16 }
  0x58   : > { %570 = vmatmul.msk.f32.vlgmr.msra.gmra.mxu2 %vm293_vm0, %v288_v8  ;;  %p800_p10 = pnand %p799_p8, %p795_p12 }
  0xd1   : > { %v346_v10 = vpop.f32.mrf.mxu1  ;;  %v314_v11 = vpop.f32.mrf.mxu0 }
  0xd2   : > { %v317_v12 = vmul.f32 0.25, %v314_v11  ;;  %384 = vmatpush.xpose.msra.mxu3 %v346_v10 }
  0xd5   : > { %385 = vmatmul.f32.vlgmr.msra.gmra.mxu3 %v317_v12 }
  0xdb   : > { %v366_v24 = vpop.f32.mrf.mxu2 }
  0xdc   : > { %419 = vmatpush.msrb.mxu3 %v366_v24 }
 0x158   : > { %v386_v17 = vpop.f32.mrf.mxu3 }
 0x159   : > { %v390_v18 = vsel %vm389_vm1, %v386_v17, -inf }
 0x15a   : > { %391 = vmax.xlane.f32.xlu0 %v390_v18 }
 0x1cd   : > { %v392_v19 = vpop.xlane.xlu0 %391 }
 0x1ce   : > { %v393_v20 = vsub.f32 %v386_v17, %v392_v19 }
 0x1d0   : > { %v394_v21 = vmul.f32 1.442695, %v393_v20 }
 0x1d2   : > { %652 = vpow2.f32 %v394_v21 }
 0x1d8   : > { %v653_v22 = vpop.eup %652 }
 0x1d9   : > { %v396_v23 = vsel %vm389_vm1, %v653_v22, 0.0 }
 0x1da   : > { %397 = vadd.xlane.f32.xlu0 %v396_v23 }
 0x24d   : > { %v398_v25 = vpop.xlane.xlu0 %397 }
 0x24e   : > { %654 = vrcp.f32 %v398_v25 }
 0x254   : > { %v655_v26 = vpop.eup %654 }
 0x255   : > { %v400_v27 = vmul.f32 %v655_v26, %v653_v22 }
 0x257   : > { %571 = vmatmul.msk.f32.vlgmr.msrb.gmra.mxu3 %vm389_vm1, %v400_v27 }
 0x2da   : > { %v421_v28 = vpop.f32.mrf.mxu3 }
 0x2db   : > { %424 = vst [vmem:[%s286_s20] sm:$0xff] %v421_v28 }
 0x2dc   : > { %803 = shalt.err (!%p800_p10)
}
 0x2dd   : > { %588 = dma.vmem_to_hbm [thread:$0]  (%p956_p4), %s439_s26, 128, %s441_s14, %s426_s29  }
 0x2de PF: > { %s452_s25 = sand.u32 1, %s842_s15   ;;  %p1090_p11 = scmp.ge.s32.totalorder %s854_s18, 2 }
 0x2df   : > { %s453_s6 = scalar_lea.sflag [#allocation4], %s452_s25 }
 0x2e0   : > { %p605_p5 = pnand %p1090_p11, %p960_p6 }
 0x2e2   : > { %p606_p13 = pneg %p605_p5 }
 0x2e4   : > { %837 = dma.done.wait (%p606_p13), %s453_s6, 128  }
 0x2e5   : > { %839 = vsyncadd (%p606_p13), %s453_s6, 4294967168  ;;  %s1091_s13 = sld [smem:[#allocation16_spill]]  ;;  %p21_p0 = scmp.ge.s32.totalorder %s930_s10, 4  }
 0x2e6   : > { %s1092_s15 = smov %s846_s16  ;;  %s1093_s16 = smov %s850_s17 }
 0x2e7   : > { %s1095_s18 = smov %s930_s10  ;;  %23 = sbr.rel (!%p21_p0) target bundleno = 11 (0xb), region = 102 }
 0x2eb   : > { %s1094_s17 = smov %s1091_s13 }
 0x2ec   :  { %459 = vsyncpa [#allocation3], 1 }
 0x2ed   :  { %461 = vsyncpa [#allocation3 + $0x1], 1 }
 0x2ee   :  { %462 = vsyncpa [#allocation6], 1 }
 0x2ef   :  { %464 = vsyncpa [#allocation6 + $0x1], 1 }
 0x2f0   :  { %465 = vsyncpa [#allocation9], 1 }
 0x2f1   :  { %466 = vsyncpa [#allocation4], 1 }
 0x2f2   :  { %468 = vsyncpa [#allocation4 + $0x1], 1 }

</bundles_post_ra>
